<compile_context>
chip_gen: v7x
topology: tpu7x:2x2x1
jax: 0.10.0
libtpu: 0.0.40
codegen_flags: <defaults>
</compile_context>

<pallas_src>
import functools

import jax
import jax.numpy as jnp
from jax.experimental import pallas as pl
from jax.experimental.pallas import tpu as pltpu


def encoder_kernel(x_ref, w1_ref, b1_ref, w2_ref, b2_ref, mu_ref, std_ref):
    """Fused mu / log_var MLPs + std epilogue for one batch tile.

    x_ref  : (tile_b, observed_dim)       f32  (cast to bf16 in-kernel)
    w1_ref : (observed_dim, 2*hidden)     bf16   [mu_w1 | lv_w1]
    b1_ref : (1, 2*hidden)                f32    [mu_b1 | lv_b1]
    w2_ref : (2*hidden, 2*out_dim)        bf16   block-diag(mu_w2, lv_w2)
    b2_ref : (1, 2*out_dim)               f32    [mu_b2 | lv_b2]
    mu_ref : (tile_b, out_dim)            f32
    std_ref: (tile_b, out_dim)            f32
    """
    x = x_ref[...].astype(jnp.bfloat16)

    # Layer 1 (both networks at once): lane-dense [tile_b, 2H] MXU pass.
    h = jnp.dot(x, w1_ref[...], preferred_element_type=jnp.float32)
    h = jnp.maximum(h + b1_ref[...], 0.0)

    # Layer 2 (block-diagonal): one [2H, 2*out] MXU pass -> [mu | log_var].
    y = jnp.dot(h.astype(jnp.bfloat16), w2_ref[...],
                preferred_element_type=jnp.float32)
    y = y + b2_ref[...]

    out_dim = y.shape[-1] // 2  # static
    mu_ref[...] = y[:, :out_dim].astype(mu_ref.dtype)
    std_ref[...] = jnp.exp(0.5 * y[:, out_dim:]).astype(std_ref.dtype)


def pack_params(p):
    """Fuse the two MLPs' weights into lane-dense / block-diagonal operands.

    Call ONCE (at init / weight-update time), not per forward call.
    """
    w1_cat = jnp.concatenate([p["mu_w1"], p["lv_w1"]], axis=1).astype(jnp.bfloat16)
    b1_cat = jnp.concatenate([p["mu_b1"], p["lv_b1"]], axis=1).astype(jnp.float32)

    z_mu = jnp.zeros_like(p["mu_w2"])
    z_lv = jnp.zeros_like(p["lv_w2"])
    top = jnp.concatenate([p["mu_w2"], z_mu], axis=1)
    bot = jnp.concatenate([z_lv, p["lv_w2"]], axis=1)
    w2_blk = jnp.concatenate([top, bot], axis=0).astype(jnp.bfloat16)
    b2_cat = jnp.concatenate([p["mu_b2"], p["lv_b2"]], axis=1).astype(jnp.float32)
    return w1_cat, b1_cat, w2_blk, b2_cat


def _round_up(x, m):
    return ((x + m - 1) // m) * m


@functools.partial(jax.jit, static_argnames=("tile_b",))
def encoder_forward(x, w1, b1, w2, b2, *, tile_b=None):
    """Runs the fused encoder forward pass on pre-packed weights.

    Returns (mu, std), each (batch, out_dim) f32.
    """
    batch, obs = x.shape
    two_h = w1.shape[1]
    two_out = w2.shape[1]
    out_dim = two_out // 2
    hidden = two_h // 2

    if tile_b is None:
        # Large tiles amortize the ~0.35us/step grid overhead, but keep at
        # least two tiles so both v7x TensorCores get work on the "parallel"
        # batch axis.  (On 1-TC v5e/v6e a couple of big tiles is also fine.)
        half = -(-batch // 2)
        tile_b = max(8, min(512, _round_up(half, 8)))
    n_tiles = pl.cdiv(batch, tile_b)

    # Advisory cost hint: count only the real (non-zero-padded) matmul work.
    flops = 2 * batch * (obs * two_h + hidden * two_out)
    bytes_accessed = (
        batch * obs * 4                        # x (f32, read once)
        + w1.size * 2 + w2.size * 2            # weights (bf16)
        + (b1.size + b2.size) * 4              # biases (f32)
        + 2 * batch * out_dim * 4              # mu + std outputs (f32)
    )
    cost = pl.CostEstimate(
        flops=flops,
        transcendentals=batch * out_dim,
        bytes_accessed=bytes_accessed,
    )

    mu, std = pl.pallas_call(
        encoder_kernel,
        out_shape=(
            jax.ShapeDtypeStruct((batch, out_dim), jnp.float32),
            jax.ShapeDtypeStruct((batch, out_dim), jnp.float32),
        ),
        grid_spec=pltpu.PrefetchScalarGridSpec(
            num_scalar_prefetch=0,
            grid=(n_tiles,),
            in_specs=[
                pl.BlockSpec((tile_b, obs), lambda i: (i, 0)),      # x tile
                pl.BlockSpec((obs, two_h), lambda i: (0, 0)),       # W1_cat
                pl.BlockSpec((1, two_h), lambda i: (0, 0)),         # b1_cat
                pl.BlockSpec((two_h, two_out), lambda i: (0, 0)),   # W2_blk
                pl.BlockSpec((1, two_out), lambda i: (0, 0)),       # b2_cat
            ],
            out_specs=[
                pl.BlockSpec((tile_b, out_dim), lambda i: (i, 0)),  # mu
                pl.BlockSpec((tile_b, out_dim), lambda i: (i, 0)),  # std
            ],
        ),
        compiler_params=pltpu.CompilerParams(
            dimension_semantics=("parallel",),
            vmem_limit_bytes=32 * 1024 * 1024,
        ),
        cost_estimate=cost,
    )(x, w1, b1, w2, b2)

    return mu, std


def init_params(key, observed_dim, hidden_dim, latent_dim):
    """Deterministic parameter init for the two (observed -> latent-1) MLPs."""
    out_dim = latent_dim - 1
    keys = jax.random.split(key, 8)

    def linear(kw, kb, fan_in, fan_out):
        scale = 1.0 / jnp.sqrt(fan_in)
        w = jax.random.uniform(kw, (fan_in, fan_out), jnp.float32, -scale, scale)
        b = jax.random.uniform(kb, (1, fan_out), jnp.float32, -scale, scale)
        return w, b

    mu_w1, mu_b1 = linear(keys[0], keys[1], observed_dim, hidden_dim)
    mu_w2, mu_b2 = linear(keys[2], keys[3], hidden_dim, out_dim)
    lv_w1, lv_b1 = linear(keys[4], keys[5], observed_dim, hidden_dim)
    lv_w2, lv_b2 = linear(keys[6], keys[7], hidden_dim, out_dim)

    return {
        "mu_w1": mu_w1, "mu_b1": mu_b1, "mu_w2": mu_w2, "mu_b2": mu_b2,
        "lv_w1": lv_w1, "lv_b1": lv_b1, "lv_w2": lv_w2, "lv_b2": lv_b2,
    }


def reference_forward(x, p):
    """Pure-JAX reference using the same bf16-operand / f32-accum math."""
    xb = x.astype(jnp.bfloat16)

    def layer1(w, b):
        h = jnp.dot(xb, w.astype(jnp.bfloat16),
                    preferred_element_type=jnp.float32) + b
        return jnp.maximum(h, 0.0)

    h_mu = layer1(p["mu_w1"], p["mu_b1"])
    h_lv = layer1(p["lv_w1"], p["lv_b1"])
    mu = jnp.dot(h_mu.astype(jnp.bfloat16), p["mu_w2"].astype(jnp.bfloat16),
                 preferred_element_type=jnp.float32) + p["mu_b2"]
    log_var = jnp.dot(h_lv.astype(jnp.bfloat16), p["lv_w2"].astype(jnp.bfloat16),
                      preferred_element_type=jnp.float32) + p["lv_b2"]
    return mu, jnp.exp(0.5 * log_var)


if __name__ == "__main__":
    # Small synthetic shapes consistent with the module's forward.
    batch = 200          # not a tile multiple -> exercises the ragged-block path
    observed_dim = 32
    hidden_dim = 64
    latent_dim = 17      # -> mu / std have latent_dim - 1 = 16 features

    key = jax.random.PRNGKey(0)
    k_x, k_p = jax.random.split(key)

    x = jax.random.normal(k_x, (batch, observed_dim), jnp.float32)
    params = init_params(k_p, observed_dim, hidden_dim, latent_dim)

    # Pack weights ONCE (not per forward call).
    w1, b1, w2, b2 = jax.tree_util.tree_map(
        jax.block_until_ready, pack_params(params))

    mu, std = encoder_forward(x, w1, b1, w2, b2)
    jax.block_until_ready((mu, std))

    mu_ref, std_ref = reference_forward(x, params)
    assert mu.shape == (batch, latent_dim - 1)
    assert std.shape == (batch, latent_dim - 1)
    assert jnp.allclose(mu, mu_ref, atol=1e-2, rtol=1e-2), (
        float(jnp.max(jnp.abs(mu - mu_ref))))
    assert jnp.allclose(std, std_ref, atol=1e-2, rtol=1e-2), (
        float(jnp.max(jnp.abs(std - std_ref))))

    print("KERNEL_OK")
</pallas_src>

<mosaic_0001>
module attributes {stable_mosaic.version = 11 : i64} {
  func.func @encoder_kernel(%arg0: i32, %arg1: memref<104x32xf32, #tpu.memory_space<vmem>>, %arg2: memref<32x128xbf16, #tpu.memory_space<vmem>>, %arg3: memref<1x128xf32, #tpu.memory_space<vmem>>, %arg4: memref<128x32xbf16, #tpu.memory_space<vmem>>, %arg5: memref<1x32xf32, #tpu.memory_space<vmem>>, %arg6: memref<104x16xf32, #tpu.memory_space<vmem>>, %arg7: memref<104x16xf32, #tpu.memory_space<vmem>>) attributes {dimension_semantics = [#tpu.dimension_semantics<parallel>], iteration_bounds = array<i64: 2>, scalar_prefetch = 0 : i64, scratch_operands = 0 : i64, tpu.core_type = #tpu.core_type<tc>, window_params = [{transform_indices = @transform_0, window_bounds = array<i64: 104, 32>}, {pipeline_mode = #tpu.pipeline_mode<synchronous>, transform_indices = @transform_1, window_bounds = array<i64: 32, 128>}, {pipeline_mode = #tpu.pipeline_mode<synchronous>, transform_indices = @transform_2, window_bounds = array<i64: 1, 128>}, {pipeline_mode = #tpu.pipeline_mode<synchronous>, transform_indices = @transform_3, window_bounds = array<i64: 128, 32>}, {pipeline_mode = #tpu.pipeline_mode<synchronous>, transform_indices = @transform_4, window_bounds = array<i64: 1, 32>}, {transform_indices = @transform_5, window_bounds = array<i64: 104, 16>}, {transform_indices = @transform_6, window_bounds = array<i64: 104, 16>}]} {
    %c0 = arith.constant 0 : index
    %c0_0 = arith.constant 0 : index
    %0 = vector.load %arg1[%c0, %c0_0] : memref<104x32xf32, #tpu.memory_space<vmem>>, vector<104x32xf32>
    %1 = arith.truncf %0 : vector<104x32xf32> to vector<104x32xbf16>
    %c0_1 = arith.constant 0 : index
    %c0_2 = arith.constant 0 : index
    %2 = vector.load %arg2[%c0_1, %c0_2] : memref<32x128xbf16, #tpu.memory_space<vmem>>, vector<32x128xbf16>
    %cst = arith.constant dense<0.000000e+00> : vector<104x128xf32>
    %3 = tpu.matmul %1, %2, %cst {dimension_numbers = #tpu.dot_dimension_numbers<[1], [0], [0], [1], [0, 0, 1, 1], [], []>} : vector<104x32xbf16>, vector<32x128xbf16>, vector<104x128xf32> -> vector<104x128xf32>
    %c0_3 = arith.constant 0 : index
    %c0_4 = arith.constant 0 : index
    %4 = vector.load %arg3[%c0_3, %c0_4] : memref<1x128xf32, #tpu.memory_space<vmem>>, vector<1x128xf32>
    %5 = vector.broadcast %4 : vector<1x128xf32> to vector<104x128xf32>
    %6 = arith.addf %3, %5 : vector<104x128xf32>
    %cst_5 = arith.constant 0.000000e+00 : f32
    %7 = vector.broadcast %cst_5 : f32 to vector<104x128xf32>
    %8 = arith.maximumf %6, %7 : vector<104x128xf32>
    %9 = arith.truncf %8 : vector<104x128xf32> to vector<104x128xbf16>
    %c0_6 = arith.constant 0 : index
    %c0_7 = arith.constant 0 : index
    %10 = vector.load %arg4[%c0_6, %c0_7] : memref<128x32xbf16, #tpu.memory_space<vmem>>, vector<128x32xbf16>
    %cst_8 = arith.constant dense<0.000000e+00> : vector<104x32xf32>
    %11 = tpu.matmul %9, %10, %cst_8 {dimension_numbers = #tpu.dot_dimension_numbers<[1], [0], [0], [1], [0, 0, 1, 1], [], []>} : vector<104x128xbf16>, vector<128x32xbf16>, vector<104x32xf32> -> vector<104x32xf32>
    %c0_9 = arith.constant 0 : index
    %c0_10 = arith.constant 0 : index
    %12 = vector.load %arg5[%c0_9, %c0_10] : memref<1x32xf32, #tpu.memory_space<vmem>>, vector<1x32xf32>
    %13 = vector.broadcast %12 : vector<1x32xf32> to vector<104x32xf32>
    %14 = arith.addf %11, %13 : vector<104x32xf32>
    %15 = vector.extract_strided_slice %14 {offsets = [0, 0], sizes = [104, 16], strides = [1, 1]} : vector<104x32xf32> to vector<104x16xf32>
    %c0_11 = arith.constant 0 : index
    %c0_12 = arith.constant 0 : index
    %16 = vector.load %arg6[%c0_11, %c0_12] : memref<104x16xf32, #tpu.memory_space<vmem>>, vector<104x16xf32>
    tpu.vector_store %arg6[%c0_11, %c0_12], %15 {strides = array<i32>} : memref<104x16xf32, #tpu.memory_space<vmem>>, vector<104x16xf32>,
    %17 = vector.extract_strided_slice %14 {offsets = [0, 16], sizes = [104, 16], strides = [1, 1]} : vector<104x32xf32> to vector<104x16xf32>
    %cst_13 = arith.constant 5.000000e-01 : f32
    %18 = vector.broadcast %cst_13 : f32 to vector<104x16xf32>
    %19 = arith.mulf %18, %17 : vector<104x16xf32>
    %20 = math.exp %19 : vector<104x16xf32>
    %c0_14 = arith.constant 0 : index
    %c0_15 = arith.constant 0 : index
    %21 = vector.load %arg7[%c0_14, %c0_15] : memref<104x16xf32, #tpu.memory_space<vmem>>, vector<104x16xf32>
    tpu.vector_store %arg7[%c0_14, %c0_15], %20 {strides = array<i32>} : memref<104x16xf32, #tpu.memory_space<vmem>>, vector<104x16xf32>,
    return
  }
  func.func @transform_0(%arg0: i32) -> (i32, i32) {
    %c0_i32 = arith.constant 0 : i32
    %c0_i32_0 = arith.constant 0 : i32
    return %arg0, %c0_i32 : i32, i32
  }
  func.func @transform_1(%arg0: i32) -> (i32, i32) {
    %c0_i32 = arith.constant 0 : i32
    %c0_i32_0 = arith.constant 0 : i32
    %c0_i32_1 = arith.constant 0 : i32
    return %c0_i32, %c0_i32_0 : i32, i32
  }
  func.func @transform_2(%arg0: i32) -> (i32, i32) {
    %c0_i32 = arith.constant 0 : i32
    %c0_i32_0 = arith.constant 0 : i32
    %c0_i32_1 = arith.constant 0 : i32
    return %c0_i32, %c0_i32_0 : i32, i32
  }
  func.func @transform_3(%arg0: i32) -> (i32, i32) {
    %c0_i32 = arith.constant 0 : i32
    %c0_i32_0 = arith.constant 0 : i32
    %c0_i32_1 = arith.constant 0 : i32
    return %c0_i32, %c0_i32_0 : i32, i32
  }
  func.func @transform_4(%arg0: i32) -> (i32, i32) {
    %c0_i32 = arith.constant 0 : i32
    %c0_i32_0 = arith.constant 0 : i32
    %c0_i32_1 = arith.constant 0 : i32
    return %c0_i32, %c0_i32_0 : i32, i32
  }
  func.func @transform_5(%arg0: i32) -> (i32, i32) {
    %c0_i32 = arith.constant 0 : i32
    %c0_i32_0 = arith.constant 0 : i32
    return %arg0, %c0_i32 : i32, i32
  }
  func.func @transform_6(%arg0: i32) -> (i32, i32) {
    %c0_i32 = arith.constant 0 : i32
    %c0_i32_0 = arith.constant 0 : i32
    return %arg0, %c0_i32 : i32, i32
  }
}

</mosaic_0001>

<bundles_post_ra>
// kernel: encoder_forward.1
= control target key start
LH: loop header
LB: loop body
LE: loop exit
PB: predicated region body
PF: predicated region fallthrough
CT: control target
= control target key end

     0   :  { %s1799_s21 = smov 0   ;;  %s1801_s22 = smov 0   ;;  %s2212_s0 = inlined_call_operand.vmem [shape: f32[200,32], index: 0, kind: input, shape index: {}]   ;;  %s2213_s1 = inlined_call_operand.vmem [shape: bf16[32,128], index: 1, kind: input, shape index: {}]   ;;  %s2214_s2 = inlined_call_operand.vmem [shape: f32[1,128], index: 2, kind: input, shape index: {}]   ;;  %s2215_s3 = inlined_call_operand.vmem [shape: bf16[128,32], index: 3, kind: input, shape index: {}]   ;;  %s2216_s4 = inlined_call_operand.vmem [shape: f32[1,32], index: 4, kind: input, shape index: {}]   ;;  %s2217_s5 = inlined_call_operand.vmem [shape: f32[200,16], index: 5, kind: output, shape index: {0}]   ;;  %s2218_s6 = inlined_call_operand.vmem [shape: f32[200,16], index: 6, kind: output, shape index: {1}]  }
   0x1   :  { %s1803_s23 = smov 0  }
   0x2 LB: > { %s1812_s24 = sadd.s32 4294967295, %s1695_s23   ;;  %s1814_s25 = sadd.s32 1, %s1695_s23   ;;  %s1695_s23 = sphi %s1803_s23, %s2228_s23   ;;  %s1691_s22 = sphi %s1801_s22, %s2227_s22   ;;  %s1687_s21 = sphi %s1799_s21, %s2226_s21  }
   0x3   : > { %s131_s26 = ssub.s32 %s1695_s23, %s1814_s25  ;;  %s134_s27 = sadd.s32 1, %s1691_s22 }
   0x4   : > { %p132_p0 = scmp.eq.s32.totalorder %s131_s26, 0  ;;  %p144_p1 = scmp.ne.s32.totalorder %s1691_s22, %s1687_s21 }
   0x5   : > { %p145_p2 = scmp.eq.s32.totalorder %s1812_s24, 1  ;;  %p1246_p3 = scmp.ge.s32.totalorder %s1695_s23, 1 }
   0x6   : > { %s1822_s28 = scalar_select %p132_p0, %s1691_s22, %s134_s27  }
   0x7   : > { %p1824_p4 = por %p145_p2, %p144_p1  ;;  %p224_p5 = scmp.lt.s32.totalorder %s1695_s23, 3 }
   0x9   : > { %p225_p6 = pnand %p1246_p3, %p224_p5 }
   0xa   : > { %v1565_v0 = vld [vmem:[%s2213_s1] sm:$0xff] (!%p225_p6)   ;;  %v1761_v1 = vmov (!%p225_p6), 0.0   ;;  %v1566_v2 = vld [vmem:[%s2213_s1 + $0x8] sm:$0xff] (!%p225_p6)   ;;  %vm1762_vm0 = vmmov (!%p225_p6), 0   ;;  %s1839_s10 = smul.u32 (!%p225_p6), 13, %s1812_s24  ;;  %vm329_vm1 = vcmask (!%p225_p6), 261120  }
   0xb   : > { %228 = sbr.rel (%p225_p6) target bundleno = 767 (0x2ff), region = 40  ;;  %1315 = vmatprep.subr.bf16.mxu0 (!%p225_p6), %v1761_v1  ;;  %1391 = vmatprep.subr.bf16.mxu1 (!%p225_p6), %v1761_v1  ;;  %v1567_v3 = vld [vmem:[%s2215_s3] sm:$0xff] (!%p225_p6)   ;;  %v1568_v4 = vld [vmem:[%s2215_s3 + $0x8] sm:$0xff] (!%p225_p6)   ;;  %v1569_v8 = vld [vmem:[%s2215_s3 + $0x10] sm:$0xff] (!%p225_p6)   ;;  %s252_s17 = sand.u32 (!%p225_p6), 1, %s1687_s21   ;;  %vm618_vm2 = vcmask (!%p225_p6), 130048  }
   0xc   : > { %1316 = vmatpush3.bf16.msra.mxu0 (!%p225_p6), %v1565_v0  ;;  %1319 = vmatprep.mubr.msk.bf16.mxu0 (!%p225_p6), %vm1762_vm0, %v1761_v1  ;;  %p266_p7 = scmp.lt.s32.totalorder (!%p225_p6), %s1839_s10, 24  ;;  %v1570_v11 = vld [vmem:[%s2215_s3 + $0x18] sm:$0xff] (!%p225_p6)   ;;  %v1571_v13 = vld [vmem:[%s2215_s3 + $0x20] sm:$0xff] (!%p225_p6)   ;;  %v1572_v16 = vld [vmem:[%s2215_s3 + $0x28] sm:$0xff] (!%p225_p6)   ;;  %s1953_s18 = smul.u32 (!%p225_p6), 104, %s252_s17 }
   0xd   : > { %1317 = vmatprep.subr.bf16.mxu0 (!%p225_p6), %v1761_v1  ;;  %1367 = vmatprep.mubr.msk.bf16.mxu1 (!%p225_p6), %vm1762_vm0, %v1761_v1  ;;  %v1573_v29 = vld [vmem:[%s2215_s3 + $0x30] sm:$0xff] (!%p225_p6)   ;;  %v1574_v30 = vld [vmem:[%s2215_s3 + $0x38] sm:$0xff] (!%p225_p6)   ;;  %v1927_v31 = vld [vmem:[%s2214_s2] ss:$0 sm:$0xff] (!%p225_p6)  ;;  %s1763_s21 = smov (!%p225_p6), 112  }
   0xe   : > { %1399 = vmatpush3.bf16.msra.mxu1 (!%p225_p6), %v1567_v3  ;;  %s1962_s23 = scalar_lea.vmem (!%p225_p6), [#allocation2], %s1953_s18   ;;  %s2016_s26 = scalar_lea.vmem (!%p225_p6), [#allocation3], %s1953_s18  }
   0xf   : > { %1392 = vmatprep.subr.bf16.mxu1 (!%p225_p6), %v1761_v1 }
  0x10   : > { %1318 = vmatpush3.bf16.msra.mxu0 (!%p225_p6), %v1566_v2 }
  0x11   : > { %1347 = vmatprep.subr.bf16.mxu0 (!%p225_p6), %v1761_v1 }
  0x12   : > { %s267_s13 = scalar_select %p266_p7, %s1839_s10, 24  ;;  %1400 = vmatpush3.bf16.msra.mxu1 %v1568_v4 }
  0x13   : > { %1393 = vmatprep.subr.bf16.mxu1 %v1761_v1  ;;  %s748_s27 = ssub.s32 (%p1824_p4), 25, %s1839_s10  ;;  %s1289_s30 = smul.u32 (%p1824_p4), 104, %s1812_s24 }
  0x14   : > { %s1247_s16 = sshll.u32 %s267_s13, 3  ;;  %p749_p8 = scmp.lt.s32.totalorder (%p1824_p4), %s748_s27, 13 }
  0x15   : > { %s1857_s19 = scalar_lea.vmem %s2212_s0, %s1247_s16  ;;  %s2051_s9 = scalar_lea.vmem (%p1824_p4), %s2217_s5, %s1289_s30  }
  0x16   : > { %v286_v5 = vld [vmem:[%s1857_s19] sm:$0xff]  ;;  %v287_v6 = vld [vmem:[%s1857_s19 + $0x8] sm:$0xff]  ;;  %1401 = vmatpush3.bf16.msra.mxu1 %v1569_v8  ;;  %v288_v9 = vld [vmem:[%s1857_s19 + $0x10] sm:$0xff] }
  0x17   : > { %v299_v7 = vpack.c.bf16 %v287_v6, %v286_v5  ;;  %v289_v10 = vld [vmem:[%s1857_s19 + $0x18] sm:$0xff]  ;;  %1394 = vmatprep.subr.bf16.mxu1 %v1761_v1  ;;  %v290_v14 = vld [vmem:[%s1857_s19 + $0x20] sm:$0xff]  ;;  %v291_v15 = vld [vmem:[%s1857_s19 + $0x28] sm:$0xff] }
  0x18   : > { %v300_v12 = vpack.c.bf16 %v289_v10, %v288_v9  ;;  %v301_v17 = vpack.c.bf16 %v291_v15, %v290_v14  ;;  %v292_v18 = vld [vmem:[%s1857_s19 + $0x30] sm:$0xff]  ;;  %v293_v19 = vld [vmem:[%s1857_s19 + $0x38] sm:$0xff]  ;;  %v294_v21 = vld [vmem:[%s1857_s19 + $0x40] sm:$0xff] }
  0x19   : > { %1320 = vmatmul.mubr.msk.bf16.vlgmr.msra.gmra.mrb[0].mxu0 %vm329_vm1, %v299_v7  ;;  %v302_v20 = vpack.c.bf16 %v293_v19, %v292_v18  ;;  %v295_v22 = vld [vmem:[%s1857_s19 + $0x48] sm:$0xff]  ;;  %v296_v24 = vld [vmem:[%s1857_s19 + $0x50] sm:$0xff]  ;;  %v297_v25 = vld [vmem:[%s1857_s19 + $0x58] sm:$0xff] }
  0x1a   : > { %1323 = vmatprep.mubr.msk.bf16.mxu0 %vm1762_vm0, %v1761_v1  ;;  %1348 = vmatpush3.bf16.msra.mxu0 %v1567_v3  ;;  %v303_v23 = vpack.c.bf16 %v295_v22, %v294_v21  ;;  %v304_v26 = vpack.c.bf16 %v297_v25, %v296_v24  ;;  %v298_v27 = vld [vmem:[%s1857_s19 + $0x60] sm:$0xff] }
  0x1b   : > { %1349 = vmatprep.subr.bf16.mxu0 %v1761_v1  ;;  %1402 = vmatpush3.bf16.msra.mxu1 %v1570_v11  ;;  %v305_v28 = vpack.c.bf16 %v298_v27, %v298_v27 }
  0x1c   : > { %1395 = vmatprep.subr.bf16.mxu1 %v1761_v1 }
  0x1e   : > { %1350 = vmatpush3.bf16.msra.mxu0 %v1568_v4 }
  0x1f   : > { %1351 = vmatprep.subr.bf16.mxu0 %v1761_v1  ;;  %1403 = vmatpush3.bf16.msra.mxu1 %v1571_v13 }
  0x20   : > { %1396 = vmatprep.subr.bf16.mxu1 %v1761_v1 }
  0x21   : > { %1324 = vmatmul.mubr.msk.bf16.gmra.mrb[4].mxu0 %vm329_vm1, %v300_v12 }
  0x22   : > { %1327 = vmatprep.mubr.msk.bf16.mxu0 %vm1762_vm0, %v1761_v1  ;;  %1352 = vmatpush3.bf16.msra.mxu0 %v1569_v8 }
  0x23   : > { %1353 = vmatprep.subr.bf16.mxu0 %v1761_v1  ;;  %1404 = vmatpush3.bf16.msra.mxu1 %v1572_v16 }
  0x24   : > { %1397 = vmatprep.subr.bf16.mxu1 %v1761_v1 }
  0x26   : > { %1354 = vmatpush3.bf16.msra.mxu0 %v1570_v11 }
  0x27   : > { %1355 = vmatprep.subr.bf16.mxu0 %v1761_v1  ;;  %1405 = vmatpush3.bf16.msra.mxu1 %v1573_v29 }
  0x28   : > { %1398 = vmatprep.subr.bf16.mxu1 %v1761_v1 }
  0x29   : > { %1328 = vmatmul.mubr.msk.bf16.gmra.mrb[8].mxu0 %vm329_vm1, %v301_v17 }
  0x2a   : > { %1331 = vmatprep.mubr.msk.bf16.mxu0 %vm1762_vm0, %v1761_v1  ;;  %1356 = vmatpush3.bf16.msra.mxu0 %v1571_v13 }
  0x2b   : > { %1357 = vmatprep.subr.bf16.mxu0 %v1761_v1  ;;  %1406 = vmatpush3.bf16.msra.mxu1 %v1574_v30 }
  0x2e   : > { %1358 = vmatpush3.bf16.msra.mxu0 %v1572_v16 }
  0x2f   : > { %1359 = vmatprep.subr.bf16.mxu0 %v1761_v1 }
  0x31   : > { %1332 = vmatmul.mubr.msk.bf16.gmra.mrb[12].mxu0 %vm329_vm1, %v302_v20 }
  0x32   : > { %1335 = vmatprep.mubr.msk.bf16.mxu0 %vm1762_vm0, %v1761_v1  ;;  %1360 = vmatpush3.bf16.msra.mxu0 %v1573_v29 }
  0x33   : > { %1361 = vmatprep.subr.bf16.mxu0 %v1761_v1 }
  0x36   : > { %1362 = vmatpush3.bf16.msra.mxu0 %v1574_v30  ;;  %v1958_v30 = vld [vmem:[%s2216_s4] ss:$0 sm:$0xff] }
  0x39   : > { %1336 = vmatmul.mubr.msk.bf16.gmra.mrb[16].mxu0 %vm329_vm1, %v303_v23 }
  0x3a   : > { %1339 = vmatprep.mubr.msk.bf16.mxu0 %vm1762_vm0, %v1761_v1 }
  0x41   : > { %1340 = vmatmul.mubr.msk.bf16.gmra.mrb[20].mxu0 %vm329_vm1, %v304_v26 }
  0x42   : > { %1343 = vmatprep.mubr.msk.bf16.mxu0 %vm1762_vm0, %v1761_v1 }
  0x49   : > { %1344 = vmatmul.mubr.msk.bf16.gmra.mrb[24].mxu0 %vm329_vm1, %v305_v28 }
  0x4a   : > { %1363 = vmatprep.mubr.msk.bf16.mxu0 %vm1762_vm0, %v1761_v1 }
  0xec   : > { %v385_v32 = vpop.f32.mrb[0].mxu0 }
  0xed   : > { %v386_v33 = vadd.f32 %v1927_v31, %v385_v32  ;;  %v1321_v34 = vpop.f32.mrb[1].mxu0 }
  0xee   : > { %v388_v35 = vpop.f32.mrb[2].mxu0 }
  0xef   : > { %v389_v36 = vadd.f32 %v1927_v31, %v388_v35  ;;  %v1322_v37 = vpop.f32.mrb[3].mxu0  ;;  %v439_v38 = vmax.f32 %v386_v33, 0.0 }
  0xf1   : > { %v440_v39 = vmax.f32 %v389_v36, 0.0 }
  0xf3   : > { %v452_v40 = vpack.c.bf16 %v440_v39, %v439_v38 }
  0xf4   : > { %v393_v41 = vpop.f32.mrb[4].mxu0 }
  0xf5   : > { %v394_v42 = vadd.f32 %v1927_v31, %v393_v41  ;;  %v1325_v43 = vpop.f32.mrb[5].mxu0  ;;  %1364 = vmatmul.mubr.bf16.vlgmr.msra.gmra.mrb[28].mxu0 %v452_v40 }
  0xf6   : > { %v396_v44 = vpop.f32.mrb[6].mxu0 }
  0xf7   : > { %v397_v45 = vadd.f32 %v1927_v31, %v396_v44  ;;  %v1326_v46 = vpop.f32.mrb[7].mxu0  ;;  %v441_v47 = vmax.f32 %v394_v42, 0.0 }
  0xf9   : > { %v442_v48 = vmax.f32 %v397_v45, 0.0 }
  0xfb   : > { %v453_v49 = vpack.c.bf16 %v442_v48, %v441_v47 }
  0xfc   : > { %v401_v50 = vpop.f32.mrb[8].mxu0 }
  0xfd   : > { %v402_v51 = vadd.f32 %v1927_v31, %v401_v50  ;;  %v1329_v52 = vpop.f32.mrb[9].mxu0  ;;  %1368 = vmatmul.mubr.bf16.vlgmr.msra.gmra.mrb[0].mxu1 %v453_v49 }
  0xfe   : > { %v404_v53 = vpop.f32.mrb[10].mxu0  ;;  %1371 = vmatprep.mubr.msk.bf16.mxu1 %vm1762_vm0, %v1761_v1 }
  0xff   : > { %v405_v54 = vadd.f32 %v1927_v31, %v404_v53  ;;  %v1330_v55 = vpop.f32.mrb[11].mxu0  ;;  %v443_v56 = vmax.f32 %v402_v51, 0.0 }
 0x101   : > { %v444_v57 = vmax.f32 %v405_v54, 0.0 }
 0x103   : > { %v454_v58 = vpack.c.bf16 %v444_v57, %v443_v56 }
 0x104   : > { %v409_v59 = vpop.f32.mrb[12].mxu0 }
 0x105   : > { %v410_v60 = vadd.f32 %v1927_v31, %v409_v59  ;;  %v1333_v61 = vpop.f32.mrb[13].mxu0  ;;  %1372 = vmatmul.mubr.bf16.gmra.mrb[4].mxu1 %v454_v58 }
 0x106   : > { %v412_v62 = vpop.f32.mrb[14].mxu0  ;;  %1375 = vmatprep.mubr.msk.bf16.mxu1 %vm1762_vm0, %v1761_v1 }
 0x107   : > { %v413_v63 = vadd.f32 %v1927_v31, %v412_v62  ;;  %v1334_v0 = vpop.f32.mrb[15].mxu0  ;;  %v445_v2 = vmax.f32 %v410_v60, 0.0 }
 0x109   : > { %v446_v3 = vmax.f32 %v413_v63, 0.0 }
 0x10b   : > { %v455_v4 = vpack.c.bf16 %v446_v3, %v445_v2 }
 0x10c   : > { %v417_v5 = vpop.f32.mrb[16].mxu0 }
 0x10d   : > { %v418_v6 = vadd.f32 %v1927_v31, %v417_v5  ;;  %v1337_v7 = vpop.f32.mrb[17].mxu0  ;;  %1376 = vmatmul.mubr.bf16.gmra.mrb[8].mxu1 %v455_v4 }
 0x10e   : > { %v420_v8 = vpop.f32.mrb[18].mxu0  ;;  %1379 = vmatprep.mubr.msk.bf16.mxu1 %vm1762_vm0, %v1761_v1 }
 0x10f   : > { %v421_v9 = vadd.f32 %v1927_v31, %v420_v8  ;;  %v1338_v10 = vpop.f32.mrb[19].mxu0  ;;  %v447_v11 = vmax.f32 %v418_v6, 0.0 }
 0x111   : > { %v448_v12 = vmax.f32 %v421_v9, 0.0 }
 0x113   : > { %v456_v13 = vpack.c.bf16 %v448_v12, %v447_v11 }
 0x114   : > { %v425_v14 = vpop.f32.mrb[20].mxu0 }
 0x115   : > { %v426_v15 = vadd.f32 %v1927_v31, %v425_v14  ;;  %v1341_v16 = vpop.f32.mrb[21].mxu0  ;;  %1380 = vmatmul.mubr.bf16.gmra.mrb[12].mxu1 %v456_v13 }
 0x116   : > { %v428_v17 = vpop.f32.mrb[22].mxu0  ;;  %1383 = vmatprep.mubr.msk.bf16.mxu1 %vm1762_vm0, %v1761_v1 }
 0x117   : > { %v429_v18 = vadd.f32 %v1927_v31, %v428_v17  ;;  %v1342_v19 = vpop.f32.mrb[23].mxu0  ;;  %v449_v20 = vmax.f32 %v426_v15, 0.0 }
 0x119   : > { %v450_v21 = vmax.f32 %v429_v18, 0.0 }
 0x11b   : > { %v457_v22 = vpack.c.bf16 %v450_v21, %v449_v20 }
 0x11c   : > { %v433_v23 = vpop.f32.mrb[24].mxu0 }
 0x11d   : > { %v434_v24 = vadd.f32 %v1927_v31, %v433_v23  ;;  %v1345_v25 = vpop.f32.mrb[25].mxu0  ;;  %1384 = vmatmul.mubr.bf16.gmra.mrb[16].mxu1 %v457_v22 }
 0x11e   : > { %v436_v26 = vpop.f32.mrb[26].mxu0  ;;  %1387 = vmatprep.mubr.msk.bf16.mxu1 %vm1762_vm0, %v1761_v1 }
 0x11f   : > { %v451_v27 = vmax.f32 %v434_v24, 0.0  ;;  %v1346_v28 = vpop.f32.mrb[27].mxu0 }
 0x121   : > { %v458_v29 = vpack.c.bf16 %v451_v27, %v451_v27 }
 0x125   : > { %1388 = vmatmul.mubr.bf16.gmra.mrb[20].mxu1 %v458_v29 }
 0x1c8   : > { %v564_v31 = vpop.f32.mrb[28].mxu0 }
 0x1c9   : > { %v565_v32 = vadd.f32 %v1958_v30, %v564_v31  ;;  %v1365_v33 = vpop.f32.mrb[29].mxu0 }
 0x1ca   : > { %v567_v34 = vpop.f32.mrb[30].mxu0 }
 0x1cb   : > { %619 = vst.msk [vmem:[%s1962_s23] sm:$0xff] %vm618_vm2, %v565_v32  ;;  %v632_v1 = vmul.f32 0.5, %v565_v32  ;;  %v568_v35 = vadd.f32 %v1958_v30, %v567_v34  ;;  %v1366_v36 = vpop.f32.mrb[31].mxu0 }
 0x1cd   : > { %v645_v37 = vmul.f32 1.442695, %v632_v1  ;;  %620 = vst.msk [vmem:[%s1962_s23 + $0x8] sm:$0xff] %vm618_vm2, %v568_v35  ;;  %v633_v38 = vmul.f32 0.5, %v568_v35 }
 0x1cf   : > { %1575 = vpow2.f32 %v645_v37  ;;  %v647_v39 = vmul.f32 1.442695, %v633_v38 }
 0x1d0   : > { %v572_v40 = vpop.f32.mrb[0].mxu1 }
 0x1d1   : > { %v573_v41 = vadd.f32 %v1958_v30, %v572_v40  ;;  %v1369_v42 = vpop.f32.mrb[1].mxu1  ;;  %1577 = vpow2.f32 %v647_v39 }
 0x1d2   : > { %v575_v43 = vpop.f32.mrb[2].mxu1 }
 0x1d3   : > { %621 = vst.msk [vmem:[%s1962_s23 + $0x10] sm:$0xff] %vm618_vm2, %v573_v41  ;;  %v634_v44 = vmul.f32 0.5, %v573_v41  ;;  %v576_v45 = vadd.f32 %v1958_v30, %v575_v43  ;;  %v1370_v46 = vpop.f32.mrb[3].mxu1 }
 0x1d5   : > { %v649_v47 = vmul.f32 1.442695, %v634_v44  ;;  %622 = vst.msk [vmem:[%s1962_s23 + $0x18] sm:$0xff] %vm618_vm2, %v576_v45  ;;  %v635_v48 = vmul.f32 0.5, %v576_v45 }
 0x1d7   : > { %1579 = vpow2.f32 %v649_v47  ;;  %v651_v49 = vmul.f32 1.442695, %v635_v48 }
 0x1d8   : > { %v580_v50 = vpop.f32.mrb[4].mxu1 }
 0x1d9   : > { %v1576_v51 = vpop.eup %1575  ;;  %v581_v52 = vadd.f32 %v1958_v30, %v580_v50  ;;  %v1373_v53 = vpop.f32.mrb[5].mxu1  ;;  %1581 = vpow2.f32 %v651_v49 }
 0x1da   : > { %v583_v54 = vpop.f32.mrb[6].mxu1  ;;  %684 = vrot.lane.b32.xlu0 %v1576_v51, %s1763_s21 }
 0x1db   : > { %623 = vst.msk [vmem:[%s1962_s23 + $0x20] sm:$0xff] %vm618_vm2, %v581_v52  ;;  %v636_v55 = vmul.f32 0.5, %v581_v52  ;;  %v584_v56 = vadd.f32 %v1958_v30, %v583_v54  ;;  %v1374_v57 = vpop.f32.mrb[7].mxu1  ;;  %v1578_v58 = vpop.eup %1577 }
 0x1dd   : > { %v653_v59 = vmul.f32 1.442695, %v636_v55  ;;  %624 = vst.msk [vmem:[%s1962_s23 + $0x28] sm:$0xff] %vm618_vm2, %v584_v56  ;;  %v637_v60 = vmul.f32 0.5, %v584_v56 }
 0x1de   : > { %686 = vrot.lane.b32.xlu0 %v1578_v58, %s1763_s21 }
 0x1df   : > { %1583 = vpow2.f32 %v653_v59  ;;  %v655_v61 = vmul.f32 1.442695, %v637_v60 }
 0x1e0   : > { %v588_v62 = vpop.f32.mrb[8].mxu1 }
 0x1e1   : > { %v1580_v63 = vpop.eup %1579  ;;  %1585 = vpow2.f32 %v655_v61  ;;  %v589_v0 = vadd.f32 %v1958_v30, %v588_v62  ;;  %v1377_v2 = vpop.f32.mrb[9].mxu1 }
 0x1e2   : > { %688 = vrot.lane.b32.xlu1 %v1580_v63, %s1763_s21  ;;  %v591_v3 = vpop.f32.mrb[10].mxu1 }
 0x1e3   : > { %625 = vst.msk [vmem:[%s1962_s23 + $0x30] sm:$0xff] %vm618_vm2, %v589_v0  ;;  %v638_v4 = vmul.f32 0.5, %v589_v0  ;;  %v592_v5 = vadd.f32 %v1958_v30, %v591_v3  ;;  %v1378_v6 = vpop.f32.mrb[11].mxu1  ;;  %v1582_v7 = vpop.eup %1581 }
 0x1e5   : > { %v657_v8 = vmul.f32 1.442695, %v638_v4  ;;  %626 = vst.msk [vmem:[%s1962_s23 + $0x38] sm:$0xff] %vm618_vm2, %v592_v5  ;;  %v639_v9 = vmul.f32 0.5, %v592_v5 }
 0x1e6   : > { %690 = vrot.lane.b32.xlu1 %v1582_v7, %s1763_s21 }
 0x1e7   : > { %1587 = vpow2.f32 %v657_v8  ;;  %v659_v10 = vmul.f32 1.442695, %v639_v9 }
 0x1e8   : > { %v596_v11 = vpop.f32.mrb[12].mxu1 }
 0x1e9   : > { %v1584_v12 = vpop.eup %1583  ;;  %1589 = vpow2.f32 %v659_v10  ;;  %v597_v13 = vadd.f32 %v1958_v30, %v596_v11  ;;  %v1381_v14 = vpop.f32.mrb[13].mxu1 }
 0x1ea   : > { %v599_v15 = vpop.f32.mrb[14].mxu1  ;;  %692 = vrot.lane.b32.xlu0 %v1584_v12, %s1763_s21 }
 0x1eb   : > { %v1586_v16 = vpop.eup %1585  ;;  %627 = vst.msk [vmem:[%s1962_s23 + $0x40] sm:$0xff] %vm618_vm2, %v597_v13  ;;  %v640_v17 = vmul.f32 0.5, %v597_v13  ;;  %v600_v18 = vadd.f32 %v1958_v30, %v599_v15  ;;  %v1382_v19 = vpop.f32.mrb[15].mxu1 }
 0x1ec   : > { %694 = vrot.lane.b32.xlu1 %v1586_v16, %s1763_s21 }
 0x1ed   : > { %v661_v20 = vmul.f32 1.442695, %v640_v17  ;;  %628 = vst.msk [vmem:[%s1962_s23 + $0x48] sm:$0xff] %vm618_vm2, %v600_v18  ;;  %v641_v21 = vmul.f32 0.5, %v600_v18 }
 0x1ef   : > { %1591 = vpow2.f32 %v661_v20  ;;  %v663_v22 = vmul.f32 1.442695, %v641_v21 }
 0x1f0   : > { %v604_v23 = vpop.f32.mrb[16].mxu1 }
 0x1f1   : > { %v1588_v24 = vpop.eup %1587  ;;  %1593 = vpow2.f32 %v663_v22  ;;  %v605_v25 = vadd.f32 %v1958_v30, %v604_v23  ;;  %v1385_v26 = vpop.f32.mrb[17].mxu1 }
 0x1f2   : > { %v607_v27 = vpop.f32.mrb[18].mxu1  ;;  %696 = vrot.lane.b32.xlu0 %v1588_v24, %s1763_s21 }
 0x1f3   : > { %v1590_v28 = vpop.eup %1589  ;;  %629 = vst.msk [vmem:[%s1962_s23 + $0x50] sm:$0xff] %vm618_vm2, %v605_v25  ;;  %v642_v29 = vmul.f32 0.5, %v605_v25  ;;  %v608_v31 = vadd.f32 %v1958_v30, %v607_v27  ;;  %v1386_v32 = vpop.f32.mrb[19].mxu1 }
 0x1f4   : > { %698 = vrot.lane.b32.xlu1 %v1590_v28, %s1763_s21 }
 0x1f5   : > { %v665_v33 = vmul.f32 1.442695, %v642_v29  ;;  %630 = vst.msk [vmem:[%s1962_s23 + $0x58] sm:$0xff] %vm618_vm2, %v608_v31  ;;  %v643_v34 = vmul.f32 0.5, %v608_v31 }
 0x1f7   : > { %1595 = vpow2.f32 %v665_v33  ;;  %v667_v1 = vmul.f32 1.442695, %v643_v34 }
 0x1f8   : > { %v612_v35 = vpop.f32.mrb[20].mxu1 }
 0x1f9   : > { %v1592_v36 = vpop.eup %1591  ;;  %1597 = vpow2.f32 %v667_v1  ;;  %v613_v37 = vadd.f32 %v1958_v30, %v612_v35  ;;  %v1389_v38 = vpop.f32.mrb[21].mxu1 }
 0x1fa   : > { %v615_v39 = vpop.f32.mrb[22].mxu1  ;;  %700 = vrot.lane.b32.xlu0 %v1592_v36, %s1763_s21 }
 0x1fb   : > { %v1594_v40 = vpop.eup %1593  ;;  %631 = vst.msk [vmem:[%s1962_s23 + $0x60] sm:$0xff] %vm618_vm2, %v613_v37  ;;  %v644_v41 = vmul.f32 0.5, %v613_v37  ;;  %v1390_v42 = vpop.f32.mrb[23].mxu1 }
 0x1fc   : > { %702 = vrot.lane.b32.xlu1 %v1594_v40, %s1763_s21 }
 0x1fd   : > { %v669_v43 = vmul.f32 1.442695, %v644_v41 }
 0x1ff   : > { %1599 = vpow2.f32 %v669_v43 }
 0x201   : > { %v1596_v44 = vpop.eup %1595 }
 0x202   : > { %704 = vrot.lane.b32.xlu0 %v1596_v44, %s1763_s21 }
 0x203   : > { %v1598_v45 = vpop.eup %1597 }
 0x204   : > { %706 = vrot.lane.b32.xlu1 %v1598_v45, %s1763_s21 }
 0x209   : > { %v1600_v30 = vpop.eup %1599 }
 0x20a   : > { %708 = vrot.lane.b32.xlu0 %v1600_v30, %s1763_s21 }
 0x24c   : > { %v685_v46 = vpop.permute.xlu0 %684 }
 0x24d   : > { %723 = vst.msk [vmem:[%s2016_s26] sm:$0xff] %vm618_vm2, %v685_v46 }
 0x250   : > { %v687_v47 = vpop.permute.xlu0 %686 }
 0x251   : > { %724 = vst.msk [vmem:[%s2016_s26 + $0x8] sm:$0xff] %vm618_vm2, %v687_v47 }
 0x254   : > { %v689_v48 = vpop.permute.xlu1 %688 }
 0x255   : > { %725 = vst.msk [vmem:[%s2016_s26 + $0x10] sm:$0xff] %vm618_vm2, %v689_v48 }
 0x258   : > { %v691_v49 = vpop.permute.xlu1 %690 }
 0x259   : > { %726 = vst.msk [vmem:[%s2016_s26 + $0x18] sm:$0xff] %vm618_vm2, %v691_v49 }
 0x25c   : > { %v693_v50 = vpop.permute.xlu0 %692 }
 0x25d   : > { %727 = vst.msk [vmem:[%s2016_s26 + $0x20] sm:$0xff] %vm618_vm2, %v693_v50 }
 0x25e   : > { %v695_v51 = vpop.permute.xlu1 %694 }
 0x25f   : > { %728 = vst.msk [vmem:[%s2016_s26 + $0x28] sm:$0xff] %vm618_vm2, %v695_v51 }
 0x264   : > { %v697_v52 = vpop.permute.xlu0 %696 }
 0x265   : > { %729 = vst.msk [vmem:[%s2016_s26 + $0x30] sm:$0xff] %vm618_vm2, %v697_v52 }
 0x266   : > { %v699_v53 = vpop.permute.xlu1 %698 }
 0x267   : > { %730 = vst.msk [vmem:[%s2016_s26 + $0x38] sm:$0xff] %vm618_vm2, %v699_v53 }
 0x26c   : > { %v701_v54 = vpop.permute.xlu0 %700 }
 0x26d   : > { %731 = vst.msk [vmem:[%s2016_s26 + $0x40] sm:$0xff] %vm618_vm2, %v701_v54 }
 0x26e   : > { %v703_v55 = vpop.permute.xlu1 %702 }
 0x26f   : > { %732 = vst.msk [vmem:[%s2016_s26 + $0x48] sm:$0xff] %vm618_vm2, %v703_v55 }
 0x274   : > { %v705_v56 = vpop.permute.xlu0 %704 }
 0x275   : > { %733 = vst.msk [vmem:[%s2016_s26 + $0x50] sm:$0xff] %vm618_vm2, %v705_v56 }
 0x276   : > { %v707_v57 = vpop.permute.xlu1 %706 }
 0x277   : > { %734 = vst.msk [vmem:[%s2016_s26 + $0x58] sm:$0xff] %vm618_vm2, %v707_v57  ;;  %746 = sbr.rel (!%p1824_p4) target bundleno = 699 (0x2bb), region = 44 }
 0x27c   : > { %v709_v58 = vpop.permute.xlu0 %708 }
 0x27d   : > { %735 = vst.msk [vmem:[%s2016_s26 + $0x60] sm:$0xff] %vm618_vm2, %v709_v58 }
 0x27e   : > { %s2230_s27 = smov (!%p749_p8, %s748_s27), 13 }
 0x27f   : > { %s1267_s11 = sshll.u32 %s2230_s27, 7 }
 0x280   : > { %p1270_p9 = scmp.eq.s32.totalorder %s1267_s11, 0 }
 0x281   : > { %1601 = sdivrem.u32 (!%p1270_p9), %s2230_s27, 13 }
 0x282   : > { %757 = sbr.rel (%p1270_p9) target bundleno = 699 (0x2bb), region = 48 }
 0x28a   : > { %s2057_s12 = spop.drf %1601 }
 0x28b   : > { %p1271_p10 = scmp.le.s32.totalorder %s2057_s12, 0 }
 0x28c   : > { %s2220_s13 = smov (!%p1271_p10), %s2051_s9  ;;  %s2221_s14 = smov (!%p1271_p10), %s1962_s23 }
 0x28d   : > { %1162 = sbr.rel (%p1271_p10) target bundleno = 670 (0x29e), region = 196  ;;  %s2066_s15 = smov (!%p1271_p10), 0  }
 0x28e   : > { %s2068_s16 = smov (!%p1271_p10), 0  }
 0x294 LB: >> { %v845_v59 = vld [vmem:[%s1703_s14] sm:$0xff]  ;;  %v847_v60 = vld [vmem:[%s1703_s14 + $0x8] sm:$0xff]  ;;  %v849_v61 = vld [vmem:[%s1703_s14 + $0x10] sm:$0xff]  ;;  %s871_s17 = sadd.s32 1, %s1707_s15  ;;  %s839_s16 = sadd.s32 1, %s1711_s16   ;;  %s1711_s16 = sphi %s2068_s16, %s839_s16   ;;  %s1707_s15 = sphi %s2066_s15, %s2222_s15   ;;  %s1703_s14 = sphi %s2221_s14, %s876_s14   ;;  %s1699_s13 = sphi %s2220_s13, %s877_s13  }
 0x295   : >> { %846 = vst [vmem:[%s1699_s13] sm:$0xff] %v845_v59  ;;  %848 = vst [vmem:[%s1699_s13 + $0x8] sm:$0xff] %v847_v60  ;;  %v851_v62 = vld [vmem:[%s1703_s14 + $0x18] sm:$0xff]  ;;  %v853_v63 = vld [vmem:[%s1703_s14 + $0x20] sm:$0xff]  ;;  %p872_p11 = scmp.ge.s32.totalorder %s871_s17, %s2057_s12  ;;  %p838_p12 = scmp.ge.s32.totalorder %s839_s16, %s2057_s12 }
 0x296   : >> { %850 = vst [vmem:[%s1699_s13 + $0x10] sm:$0xff] %v849_v61  ;;  %v855_v0 = vld [vmem:[%s1703_s14 + $0x28] sm:$0xff]  ;;  %852 = vst [vmem:[%s1699_s13 + $0x18] sm:$0xff] %v851_v62  ;;  %v857_v2 = vld [vmem:[%s1703_s14 + $0x30] sm:$0xff] }
 0x297   : >> { %854 = vst [vmem:[%s1699_s13 + $0x20] sm:$0xff] %v853_v63  ;;  %856 = vst [vmem:[%s1699_s13 + $0x28] sm:$0xff] %v855_v0  ;;  %v859_v3 = vld [vmem:[%s1703_s14 + $0x38] sm:$0xff]  ;;  %v861_v4 = vld [vmem:[%s1703_s14 + $0x40] sm:$0xff]  ;;  %s2232_s17 = smov (%p872_p11, %s871_s17), 0  ;;  %841 = sbr.rel (!%p838_p12) target bundleno = 660 (0x294), region = 202 }
 0x298   : >> { %858 = vst [vmem:[%s1699_s13 + $0x30] sm:$0xff] %v857_v2  ;;  %860 = vst [vmem:[%s1699_s13 + $0x38] sm:$0xff] %v859_v3  ;;  %v863_v5 = vld [vmem:[%s1703_s14 + $0x48] sm:$0xff]  ;;  %v865_v6 = vld [vmem:[%s1703_s14 + $0x50] sm:$0xff]  ;;  %s874_s18 = smul.u32 104, %s2232_s17  ;;  %s2222_s15 = smov %s2232_s17 }
 0x299   : >> { %862 = vst [vmem:[%s1699_s13 + $0x40] sm:$0xff] %v861_v4  ;;  %v867_v7 = vld [vmem:[%s1703_s14 + $0x58] sm:$0xff]  ;;  %864 = vst [vmem:[%s1699_s13 + $0x48] sm:$0xff] %v863_v5  ;;  %v869_v8 = vld [vmem:[%s1703_s14 + $0x60] sm:$0xff] }
 0x29a   : >> { %866 = vst [vmem:[%s1699_s13 + $0x50] sm:$0xff] %v865_v6  ;;  %868 = vst [vmem:[%s1699_s13 + $0x58] sm:$0xff] %v867_v7  ;;  %s876_s14 = scalar_lea.vmem %s1962_s23, %s874_s18 [#allocation2]  }
 0x29b   : >> { %870 = vst [vmem:[%s1699_s13 + $0x60] sm:$0xff] %v869_v8  ;;  %s877_s13 = scalar_lea.vmem %s2051_s9, %s874_s18  }
 0x29e PF: > { %1603 = sdivrem.u32 %s2230_s27, 13 }
 0x29f   : > { %s1272_s19 = smul.u32 104, %s2057_s12 }
 0x2a1   : > { %s882_s20 = scalar_lea.vmem %s1962_s23, %s1272_s19 [#allocation2]   ;;  %s884_s21 = scalar_lea.vmem %s2051_s9, %s1272_s19  }
 0x2a7   : > { %s1604_s30 = spop.drf %1603 }
 0x2a8   : > { %p1274_p13 = scmp.le.s32.totalorder %s1604_s30, 0 }
 0x2a9   : > { %s1713_s7 = smov (!%p1274_p13), %s884_s21   ;;  %s1717_s8 = smov (!%p1274_p13), %s882_s20  }
 0x2aa   : > { %1176 = sbr.rel (%p1274_p13) target bundleno = 699 (0x2bb), region = 207  ;;  %s1721_s11 = smov (!%p1274_p13), 0  }
 0x2ab   : > { %s1725_s18 = smov (!%p1274_p13), 0  }
 0x2b1 LB: >> { %v894_v9 = vld [vmem:[%s1719_s8] sm:$0xff]  ;;  %s896_s13 = sadd.s32 1, %s1723_s11  ;;  %s888_s18 = sadd.s32 1, %s1727_s18   ;;  %s1727_s18 = sphi %s1725_s18, %s888_s18   ;;  %s1723_s11 = sphi %s1721_s11, %s1722_s11   ;;  %s1719_s8 = sphi %s1717_s8, %s901_s8   ;;  %s1715_s7 = sphi %s1713_s7, %s902_s7  }
 0x2b2   : >> { %895 = vst [vmem:[%s1715_s7] sm:$0xff] %v894_v9  ;;  %p897_p0 = scmp.ge.s32.totalorder %s896_s13, %s1604_s30  ;;  %p887_p1 = scmp.ge.s32.totalorder %s888_s18, %s1604_s30 }
 0x2b4   : >> { %s2234_s13 = smov (%p897_p0, %s896_s13), 0  ;;  %890 = sbr.rel (!%p887_p1) target bundleno = 689 (0x2b1), region = 213 }
 0x2b5   : >> { %s1275_s23 = sshll.u32 %s2234_s13, 3  ;;  %s1722_s11 = smov %s2234_s13  }
 0x2b6   : >> { %s901_s8 = scalar_lea.vmem %s882_s20, %s1275_s23 [#allocation2]   ;;  %s902_s7 = scalar_lea.vmem %s884_s21, %s1275_s23  }
 0x2bb PF: > { %908 = sbr.rel (!%p1824_p4) target bundleno = 767 (0x2ff), region = 96  ;;  %s910_s27 = ssub.s32 (%p1824_p4), 25, %s1839_s10 }
 0x2bc   : > { %s1290_s9 = smul.u32 (%p1824_p4), 104, %s1812_s24  ;;  %p911_p2 = scmp.lt.s32.totalorder (%p1824_p4), %s910_s27, 13 }
 0x2be   : > { %s2130_s15 = scalar_lea.vmem (%p1824_p4), %s2218_s6, %s1290_s9  }
 0x2c2   : > { %s2236_s27 = smov (!%p911_p2, %s910_s27), 13 }
 0x2c3   : > { %s1277_s16 = sshll.u32 %s2236_s27, 7 }
 0x2c4   : > { %p1280_p3 = scmp.eq.s32.totalorder %s1277_s16, 0 }
 0x2c5   : > { %1605 = sdivrem.u32 (!%p1280_p3), %s2236_s27, 13 }
 0x2c6   : > { %919 = sbr.rel (%p1280_p3) target bundleno = 767 (0x2ff), region = 100 }
 0x2ce   : > { %s2136_s29 = spop.drf %1605 }
 0x2cf   : > { %p1281_p4 = scmp.le.s32.totalorder %s2136_s29, 0 }
 0x2d0   : > { %s2223_s24 = smov (!%p1281_p4), %s2130_s15  ;;  %s2224_s10 = smov (!%p1281_p4), %s2016_s26 }
 0x2d1   : > { %1190 = sbr.rel (%p1281_p4) target bundleno = 738 (0x2e2), region = 218  ;;  %s2145_s17 = smov (!%p1281_p4), 0  }
 0x2d2   : > { %s2147_s19 = smov (!%p1281_p4), 0  }
 0x2d8 LB: >> { %v1007_v10 = vld [vmem:[%s1735_s10] sm:$0xff]  ;;  %v1009_v11 = vld [vmem:[%s1735_s10 + $0x8] sm:$0xff]  ;;  %v1011_v12 = vld [vmem:[%s1735_s10 + $0x10] sm:$0xff]  ;;  %s1033_s20 = sadd.s32 1, %s1739_s17  ;;  %s1001_s19 = sadd.s32 1, %s1743_s19   ;;  %s1743_s19 = sphi %s2147_s19, %s1001_s19   ;;  %s1739_s17 = sphi %s2145_s17, %s2225_s17   ;;  %s1735_s10 = sphi %s2224_s10, %s1038_s10   ;;  %s1731_s24 = sphi %s2223_s24, %s1039_s24  }
 0x2d9   : >> { %1008 = vst [vmem:[%s1731_s24] sm:$0xff] %v1007_v10  ;;  %1010 = vst [vmem:[%s1731_s24 + $0x8] sm:$0xff] %v1009_v11  ;;  %v1013_v13 = vld [vmem:[%s1735_s10 + $0x18] sm:$0xff]  ;;  %v1015_v14 = vld [vmem:[%s1735_s10 + $0x20] sm:$0xff]  ;;  %p1034_p5 = scmp.ge.s32.totalorder %s1033_s20, %s2136_s29  ;;  %p1000_p6 = scmp.ge.s32.totalorder %s1001_s19, %s2136_s29 }
 0x2da   : >> { %1012 = vst [vmem:[%s1731_s24 + $0x10] sm:$0xff] %v1011_v12  ;;  %v1017_v15 = vld [vmem:[%s1735_s10 + $0x28] sm:$0xff]  ;;  %1014 = vst [vmem:[%s1731_s24 + $0x18] sm:$0xff] %v1013_v13  ;;  %v1019_v16 = vld [vmem:[%s1735_s10 + $0x30] sm:$0xff] }
 0x2db   : >> { %1016 = vst [vmem:[%s1731_s24 + $0x20] sm:$0xff] %v1015_v14  ;;  %1018 = vst [vmem:[%s1731_s24 + $0x28] sm:$0xff] %v1017_v15  ;;  %v1021_v17 = vld [vmem:[%s1735_s10 + $0x38] sm:$0xff]  ;;  %v1023_v18 = vld [vmem:[%s1735_s10 + $0x40] sm:$0xff]  ;;  %s2238_s20 = smov (%p1034_p5, %s1033_s20), 0  ;;  %1003 = sbr.rel (!%p1000_p6) target bundleno = 728 (0x2d8), region = 224 }
 0x2dc   : >> { %1020 = vst [vmem:[%s1731_s24 + $0x30] sm:$0xff] %v1019_v16  ;;  %1022 = vst [vmem:[%s1731_s24 + $0x38] sm:$0xff] %v1021_v17  ;;  %v1025_v19 = vld [vmem:[%s1735_s10 + $0x48] sm:$0xff]  ;;  %v1027_v20 = vld [vmem:[%s1735_s10 + $0x50] sm:$0xff]  ;;  %s1036_s21 = smul.u32 104, %s2238_s20  ;;  %s2225_s17 = smov %s2238_s20 }
 0x2dd   : >> { %1024 = vst [vmem:[%s1731_s24 + $0x40] sm:$0xff] %v1023_v18  ;;  %v1029_v21 = vld [vmem:[%s1735_s10 + $0x58] sm:$0xff]  ;;  %1026 = vst [vmem:[%s1731_s24 + $0x48] sm:$0xff] %v1025_v19  ;;  %v1031_v22 = vld [vmem:[%s1735_s10 + $0x60] sm:$0xff] }
 0x2de   : >> { %1028 = vst [vmem:[%s1731_s24 + $0x50] sm:$0xff] %v1027_v20  ;;  %1030 = vst [vmem:[%s1731_s24 + $0x58] sm:$0xff] %v1029_v21  ;;  %s1038_s10 = scalar_lea.vmem %s2016_s26, %s1036_s21 [#allocation3]  }
 0x2df   : >> { %1032 = vst [vmem:[%s1731_s24 + $0x60] sm:$0xff] %v1031_v22  ;;  %s1039_s24 = scalar_lea.vmem %s2130_s15, %s1036_s21  }
 0x2e2 PF: > { %1607 = sdivrem.u32 %s2236_s27, 13 }
 0x2e3   : > { %s1282_s30 = smul.u32 104, %s2136_s29 }
 0x2e5   : > { %s1044_s7 = scalar_lea.vmem %s2016_s26, %s1282_s30 [#allocation3]   ;;  %s1046_s8 = scalar_lea.vmem %s2130_s15, %s1282_s30  }
 0x2eb   : > { %s1608_s11 = spop.drf %1607 }
 0x2ec   : > { %p1284_p7 = scmp.le.s32.totalorder %s1608_s11, 0 }
 0x2ed   : > { %s1745_s18 = smov (!%p1284_p7), %s1046_s8   ;;  %s1749_s13 = smov (!%p1284_p7), %s1044_s7  }
 0x2ee   : > { %1204 = sbr.rel (%p1284_p7) target bundleno = 767 (0x2ff), region = 229  ;;  %s1753_s23 = smov (!%p1284_p7), 0  }
 0x2ef   : > { %s1757_s9 = smov (!%p1284_p7), 0  }
 0x2f5 LB: >> { %v1056_v23 = vld [vmem:[%s1751_s13] sm:$0xff]  ;;  %s1058_s12 = sadd.s32 1, %s1755_s23  ;;  %s1050_s9 = sadd.s32 1, %s1759_s9   ;;  %s1759_s9 = sphi %s1757_s9, %s1050_s9   ;;  %s1755_s23 = sphi %s1753_s23, %s1754_s23   ;;  %s1751_s13 = sphi %s1749_s13, %s1063_s13   ;;  %s1747_s18 = sphi %s1745_s18, %s1064_s18  }
 0x2f6   : >> { %1057 = vst [vmem:[%s1747_s18] sm:$0xff] %v1056_v23  ;;  %p1059_p8 = scmp.ge.s32.totalorder %s1058_s12, %s1608_s11  ;;  %p1049_p9 = scmp.ge.s32.totalorder %s1050_s9, %s1608_s11 }
 0x2f8   : >> { %s2240_s12 = smov (%p1059_p8, %s1058_s12), 0  ;;  %1052 = sbr.rel (!%p1049_p9) target bundleno = 757 (0x2f5), region = 235 }
 0x2f9   : >> { %s1285_s26 = sshll.u32 %s2240_s12, 3  ;;  %s1754_s23 = smov %s2240_s12  }
 0x2fa   : >> { %s1063_s13 = scalar_lea.vmem %s1044_s7, %s1285_s26 [#allocation3]   ;;  %s1064_s18 = scalar_lea.vmem %s1046_s8, %s1285_s26  }
 0x2ff PF: > { %p14_p10 = scmp.ge.s32.totalorder %s1814_s25, 4   ;;  %s2226_s21 = smov %s1691_s22 }
 0x300   : > { %s2227_s22 = smov %s1822_s28  ;;  %s2228_s23 = smov %s1814_s25 }
 0x301   :  { %16 = sbr.rel (!%p14_p10) target bundleno = 2 (0x2), region = 246 }

</bundles_post_ra>
